<compile_context>
chip_gen: v7x
topology: tpu7x:2x2x1
jax: 0.10.0
libtpu: 0.0.40
codegen_flags: <defaults>
</compile_context>

<pallas_src>
import functools

import jax
import jax.numpy as jnp
from jax.experimental import pallas as pl
from jax.experimental.pallas import tpu as pltpu


# ----------------------------- Pallas kernels ------------------------------

def _resmlp_kernel_with_img(res_ref, img_ref,
                            wi_ref, bi_ref,
                            w1_ref, b1_ref,
                            w2_ref, b2_ref,
                            o_ref, *, matmul_dtype):
    # res_ref: (TILE_N, H)   img_ref: (TILE_N, F)
    # wi_ref:  (F, H)        bi_ref:  (1, H)
    # w1_ref:  (H, H)        b1_ref:  (1, H)
    # w2_ref:  (H, H)        b2_ref:  (1, H)
    x = res_ref[...].astype(jnp.float32)

    # img_mlp: Linear + ReLU, added to the residual input.
    img_h = jnp.dot(img_ref[...].astype(matmul_dtype),
                    wi_ref[...].astype(matmul_dtype),
                    preferred_element_type=jnp.float32)
    img_h = img_h + bi_ref[...].astype(jnp.float32)
    x = x + jnp.maximum(img_h, 0.0)

    # mlp: Linear -> ReLU -> Linear -> ReLU
    h = jnp.dot(x.astype(matmul_dtype), w1_ref[...].astype(matmul_dtype),
                preferred_element_type=jnp.float32)
    h = jnp.maximum(h + b1_ref[...].astype(jnp.float32), 0.0)
    h = jnp.dot(h.astype(matmul_dtype), w2_ref[...].astype(matmul_dtype),
                preferred_element_type=jnp.float32)
    h = jnp.maximum(h + b2_ref[...].astype(jnp.float32), 0.0)

    # Residual connection.
    o_ref[...] = (h + x).astype(o_ref.dtype)


def _resmlp_kernel_no_img(res_ref,
                          w1_ref, b1_ref,
                          w2_ref, b2_ref,
                          o_ref, *, matmul_dtype):
    x = res_ref[...].astype(jnp.float32)
    h = jnp.dot(x.astype(matmul_dtype), w1_ref[...].astype(matmul_dtype),
                preferred_element_type=jnp.float32)
    h = jnp.maximum(h + b1_ref[...].astype(jnp.float32), 0.0)
    h = jnp.dot(h.astype(matmul_dtype), w2_ref[...].astype(matmul_dtype),
                preferred_element_type=jnp.float32)
    h = jnp.maximum(h + b2_ref[...].astype(jnp.float32), 0.0)
    o_ref[...] = (h + x).astype(o_ref.dtype)


# ------------------------------ helpers -------------------------------------

_MAX_TILE_ROWS = 2048          # hard cap on the row tile
_SPLIT_ROWS = 512              # above this, use >=2 tiles (v7x megacore)
_DEFAULT_VMEM = 64 * 1024 * 1024  # conservative fallback (v7x per-core physical)


def _round_up(x, m):
    return ((x + m - 1) // m) * m


def _round_down(x, m):
    return (x // m) * m


def _sublane_granule(dtype):
    # f32 -> 8, bf16 -> 16, int8/fp8 -> 32 (second-to-last dim granule).
    return max(8, 32 // jnp.dtype(dtype).itemsize)


def _vmem_capacity_bytes():
    try:
        info = pltpu.get_tpu_info()
        cap = getattr(info, "vmem_capacity_bytes", None)
        if cap:
            return int(cap)
    except Exception:
        pass
    return _DEFAULT_VMEM


def _resident_spec(shape, single_buffer):
    """Spec for a block whose index never changes (weights / biases)."""
    index_map = lambda *_: (0,) * len(shape)
    if single_buffer and hasattr(pl, "Buffered"):
        try:
            return pl.BlockSpec(shape, index_map, pipeline_mode=pl.Buffered(1))
        except TypeError:
            pass  # older BlockSpec signature: fall back to default buffering
    return pl.BlockSpec(shape, index_map)


def _pick_tile_n(n, granule, max_tile):
    """Row tile: full extent for small N, multiple of the sublane granule
    otherwise, >=2 tiles for large N so both v7x TensorCores get work."""
    if n <= granule:
        return max(n, 1)
    if n <= max_tile:
        if n >= _SPLIT_ROWS:
            return min(max_tile, _round_up(-(-n // 2), granule))
        return n  # single full-extent tile (always layout-legal)
    return max_tile


# ------------------------------ JAX wrapper --------------------------------

def resmlp_forward(params, res_input, img_f_input=None, *,
                   matmul_dtype=jnp.bfloat16):
    """Pallas implementation of ResMLP.forward.

    params: dict with keys
      'w1','b1','w2','b2'            (always)   -- w: (H, H), b: (1, H)
      'wi','bi'                      (img path) -- wi: (F, H), bi: (1, H)
    res_input:   (N, hidden_ch)
    img_f_input: (N, img_f_ch) or None
    matmul_dtype: dtype fed to the MXU (accumulation is always f32).
    """
    n, hidden_ch = res_input.shape
    out_dtype = res_input.dtype
    act_itemsize = jnp.dtype(out_dtype).itemsize

    has_img = img_f_input is not None
    img_f_ch = img_f_input.shape[1] if has_img else 0

    granule = _sublane_granule(out_dtype)
    if has_img:
        granule = max(granule, _sublane_granule(img_f_input.dtype))

    # ---- VMEM budget -> row tile size ----
    capacity = _vmem_capacity_bytes()

    w_itemsize = jnp.dtype(params['w1'].dtype).itemsize
    w_elems = 2 * hidden_ch * hidden_ch + 2 * hidden_ch
    if has_img:
        w_elems += img_f_ch * hidden_ch + hidden_ch
    w_bytes = w_elems * w_itemsize  # single copy; x2 below as a worst case

    # Per-row VMEM: double-buffered in/img/out tiles + f32/bf16 kernel temps.
    per_row = 2 * (2 * hidden_ch + img_f_ch) * act_itemsize
    per_row += 6 * hidden_ch * 4

    rows_budget = max(capacity // 2 - 2 * w_bytes, per_row * granule)
    max_tile = max(granule,
                   min(_MAX_TILE_ROWS, _round_down(rows_budget // per_row, granule)))

    tile_n = _pick_tile_n(n, granule, max_tile)
    num_tiles = -(-n // tile_n)

    vmem_needed = tile_n * per_row + 2 * w_bytes + (4 << 20)
    vmem_limit = int(min(int(capacity * 0.9), max(vmem_needed, 16 << 20)))

    # ---- cost estimate (hint for XLA scheduling) ----
    if has_img:
        flops = 2 * n * hidden_ch * (img_f_ch + 2 * hidden_ch)
        bytes_accessed = n * (2 * hidden_ch + img_f_ch) * act_itemsize + w_bytes
    else:
        flops = 2 * n * hidden_ch * (2 * hidden_ch)
        bytes_accessed = n * 2 * hidden_ch * act_itemsize + w_bytes

    def _build_and_run(single_buffer_weights):
        act_spec = pl.BlockSpec((tile_n, hidden_ch), lambda i: (i, 0))
        out_spec = pl.BlockSpec((tile_n, hidden_ch), lambda i: (i, 0))
        w_spec = _resident_spec((hidden_ch, hidden_ch), single_buffer_weights)
        b_spec = _resident_spec((1, hidden_ch), single_buffer_weights)

        if has_img:
            args = (res_input, img_f_input,
                    params['wi'], params['bi'],
                    params['w1'], params['b1'],
                    params['w2'], params['b2'])
            in_specs = [act_spec,
                        pl.BlockSpec((tile_n, img_f_ch), lambda i: (i, 0)),
                        _resident_spec((img_f_ch, hidden_ch), single_buffer_weights),
                        b_spec,
                        w_spec, b_spec,
                        w_spec, b_spec]
            kernel = functools.partial(_resmlp_kernel_with_img,
                                       matmul_dtype=matmul_dtype)
        else:
            args = (res_input,
                    params['w1'], params['b1'],
                    params['w2'], params['b2'])
            in_specs = [act_spec, w_spec, b_spec, w_spec, b_spec]
            kernel = functools.partial(_resmlp_kernel_no_img,
                                       matmul_dtype=matmul_dtype)

        return pl.pallas_call(
            kernel,
            out_shape=jax.ShapeDtypeStruct((n, hidden_ch), out_dtype),
            grid=(num_tiles,),
            in_specs=in_specs,
            out_specs=out_spec,
            compiler_params=pltpu.CompilerParams(
                dimension_semantics=("parallel",),
                vmem_limit_bytes=vmem_limit,
            ),
            cost_estimate=pl.CostEstimate(
                flops=int(flops), transcendentals=0,
                bytes_accessed=int(bytes_accessed)),
        )(*args)

    try:
        return _build_and_run(single_buffer_weights=True)
    except Exception:
        # If single-buffering of resident blocks is rejected by this JAX
        # version, retry with default (double-buffered) weight specs.
        return _build_and_run(single_buffer_weights=False)


def init_resmlp_params(key, hidden_ch, img_f_ch=None, dtype=jnp.float32):
    """Deterministic synthetic parameters. Weights stored as (in_ch, out_ch);
    biases stored as (1, out_ch) so everything stays 2-D for TPU."""
    keys = jax.random.split(key, 6)
    scale = 0.1
    params = {
        'w1': scale * jax.random.normal(keys[0], (hidden_ch, hidden_ch), dtype),
        'b1': scale * jax.random.normal(keys[1], (1, hidden_ch), dtype),
        'w2': scale * jax.random.normal(keys[2], (hidden_ch, hidden_ch), dtype),
        'b2': scale * jax.random.normal(keys[3], (1, hidden_ch), dtype),
    }
    if img_f_ch is not None:
        params['wi'] = scale * jax.random.normal(keys[4], (img_f_ch, hidden_ch), dtype)
        params['bi'] = scale * jax.random.normal(keys[5], (1, hidden_ch), dtype)
    return params


def resmlp_reference(params, res_input, img_f_input=None):
    """Pure-JAX reference matching the PyTorch module exactly (true f32)."""
    hp = jax.lax.Precision.HIGHEST
    x = res_input
    if img_f_input is not None:
        x = x + jax.nn.relu(
            jnp.dot(img_f_input, params['wi'], precision=hp) + params['bi'])
    h = jax.nn.relu(jnp.dot(x, params['w1'], precision=hp) + params['b1'])
    h = jax.nn.relu(jnp.dot(h, params['w2'], precision=hp) + params['b2'])
    return h + x


# --------------------------------- main -------------------------------------

if __name__ == "__main__":
    key = jax.random.PRNGKey(0)
    k_param, k_res, k_img = jax.random.split(key, 3)

    # Small shapes consistent with the module: N points of hidden_ch features,
    # plus an image-feature input of img_f_ch channels.
    N = 8
    hidden_ch = 32
    img_f_ch = 16

    params = init_resmlp_params(k_param, hidden_ch, img_f_ch)
    res_input = jax.random.normal(k_res, (N, hidden_ch), jnp.float32)
    img_f_input = jax.random.normal(k_img, (N, img_f_ch), jnp.float32)

    ref = resmlp_reference(params, res_input, img_f_input)
    ref_no_img = resmlp_reference(params, res_input, None)

    # Strict correctness check: f32 MXU path against the f32 reference.
    out_f32 = jax.block_until_ready(
        resmlp_forward(params, res_input, img_f_input, matmul_dtype=jnp.float32))
    out_f32_ni = jax.block_until_ready(
        resmlp_forward(params, res_input, None, matmul_dtype=jnp.float32))
    assert out_f32.shape == ref.shape
    assert out_f32_ni.shape == ref_no_img.shape
    assert jnp.allclose(out_f32, ref, atol=1e-4, rtol=1e-4)
    assert jnp.allclose(out_f32_ni, ref_no_img, atol=1e-4, rtol=1e-4)

    # Default fast path: bf16 MXU operands, f32 accumulation / elementwise.
    out_bf16 = jax.block_until_ready(resmlp_forward(params, res_input, img_f_input))
    out_bf16_ni = jax.block_until_ready(resmlp_forward(params, res_input, None))
    assert jnp.allclose(out_bf16, ref, atol=1e-1, rtol=5e-2)
    assert jnp.allclose(out_bf16_ni, ref_no_img, atol=1e-1, rtol=5e-2)

    # Larger case: exercises row tiling and the masked boundary tile
    # (N is not a multiple of the tile size; no row padding in HBM).
    N_big = 1000
    res_big = jax.random.normal(jax.random.PRNGKey(1), (N_big, hidden_ch), jnp.float32)
    img_big = jax.random.normal(jax.random.PRNGKey(2), (N_big, img_f_ch), jnp.float32)
    ref_big = resmlp_reference(params, res_big, img_big)
    out_big_f32 = jax.block_until_ready(
        resmlp_forward(params, res_big, img_big, matmul_dtype=jnp.float32))
    assert out_big_f32.shape == ref_big.shape
    assert jnp.allclose(out_big_f32, ref_big, atol=1e-4, rtol=1e-4)
    out_big_bf16 = jax.block_until_ready(resmlp_forward(params, res_big, img_big))
    assert jnp.allclose(out_big_bf16, ref_big, atol=1e-1, rtol=5e-2)

    print("KERNEL_OK")
</pallas_src>

<mosaic_0001>
module attributes {stable_mosaic.version = 11 : i64} {
  func.func @_resmlp_kernel_with_img(%arg0: i32, %arg1: memref<8x32xf32, #tpu.memory_space<vmem>>, %arg2: memref<8x16xf32, #tpu.memory_space<vmem>>, %arg3: memref<16x32xf32, #tpu.memory_space<vmem>>, %arg4: memref<1x32xf32, #tpu.memory_space<vmem>>, %arg5: memref<32x32xf32, #tpu.memory_space<vmem>>, %arg6: memref<1x32xf32, #tpu.memory_space<vmem>>, %arg7: memref<32x32xf32, #tpu.memory_space<vmem>>, %arg8: memref<1x32xf32, #tpu.memory_space<vmem>>, %arg9: memref<8x32xf32, #tpu.memory_space<vmem>>) attributes {dimension_semantics = [#tpu.dimension_semantics<parallel>], iteration_bounds = array<i64: 1>, scalar_prefetch = 0 : i64, scratch_operands = 0 : i64, tpu.core_type = #tpu.core_type<tc>, window_params = [{transform_indices = @transform_0, window_bounds = array<i64: 8, 32>}, {transform_indices = @transform_1, window_bounds = array<i64: 8, 16>}, {pipeline_mode = #tpu.pipeline_mode<synchronous>, transform_indices = @transform_2, window_bounds = array<i64: 16, 32>}, {pipeline_mode = #tpu.pipeline_mode<synchronous>, transform_indices = @transform_3, window_bounds = array<i64: 1, 32>}, {pipeline_mode = #tpu.pipeline_mode<synchronous>, transform_indices = @transform_4, window_bounds = array<i64: 32, 32>}, {pipeline_mode = #tpu.pipeline_mode<synchronous>, transform_indices = @transform_5, window_bounds = array<i64: 1, 32>}, {pipeline_mode = #tpu.pipeline_mode<synchronous>, transform_indices = @transform_6, window_bounds = array<i64: 32, 32>}, {pipeline_mode = #tpu.pipeline_mode<synchronous>, transform_indices = @transform_7, window_bounds = array<i64: 1, 32>}, {transform_indices = @transform_8, window_bounds = array<i64: 8, 32>}]} {
    %c0 = arith.constant 0 : index
    %c0_0 = arith.constant 0 : index
    %0 = vector.load %arg1[%c0, %c0_0] : memref<8x32xf32, #tpu.memory_space<vmem>>, vector<8x32xf32>
    %c0_1 = arith.constant 0 : index
    %c0_2 = arith.constant 0 : index
    %1 = vector.load %arg2[%c0_1, %c0_2] : memref<8x16xf32, #tpu.memory_space<vmem>>, vector<8x16xf32>
    %c0_3 = arith.constant 0 : index
    %c0_4 = arith.constant 0 : index
    %2 = vector.load %arg3[%c0_3, %c0_4] : memref<16x32xf32, #tpu.memory_space<vmem>>, vector<16x32xf32>
    %cst = arith.constant dense<0.000000e+00> : vector<8x32xf32>
    %3 = tpu.matmul %1, %2, %cst {dimension_numbers = #tpu.dot_dimension_numbers<[1], [0], [0], [1], [0, 0, 1, 1], [], []>} : vector<8x16xf32>, vector<16x32xf32>, vector<8x32xf32> -> vector<8x32xf32>
    %c0_5 = arith.constant 0 : index
    %c0_6 = arith.constant 0 : index
    %4 = vector.load %arg4[%c0_5, %c0_6] : memref<1x32xf32, #tpu.memory_space<vmem>>, vector<1x32xf32>
    %5 = vector.broadcast %4 : vector<1x32xf32> to vector<8x32xf32>
    %6 = arith.addf %3, %5 : vector<8x32xf32>
    %cst_7 = arith.constant 0.000000e+00 : f32
    %7 = vector.broadcast %cst_7 : f32 to vector<8x32xf32>
    %8 = arith.maximumf %6, %7 : vector<8x32xf32>
    %9 = arith.addf %0, %8 : vector<8x32xf32>
    %c0_8 = arith.constant 0 : index
    %c0_9 = arith.constant 0 : index
    %10 = vector.load %arg5[%c0_8, %c0_9] : memref<32x32xf32, #tpu.memory_space<vmem>>, vector<32x32xf32>
    %cst_10 = arith.constant dense<0.000000e+00> : vector<8x32xf32>
    %11 = tpu.matmul %9, %10, %cst_10 {dimension_numbers = #tpu.dot_dimension_numbers<[1], [0], [0], [1], [0, 0, 1, 1], [], []>} : vector<8x32xf32>, vector<32x32xf32>, vector<8x32xf32> -> vector<8x32xf32>
    %c0_11 = arith.constant 0 : index
    %c0_12 = arith.constant 0 : index
    %12 = vector.load %arg6[%c0_11, %c0_12] : memref<1x32xf32, #tpu.memory_space<vmem>>, vector<1x32xf32>
    %13 = vector.broadcast %12 : vector<1x32xf32> to vector<8x32xf32>
    %14 = arith.addf %11, %13 : vector<8x32xf32>
    %cst_13 = arith.constant 0.000000e+00 : f32
    %15 = vector.broadcast %cst_13 : f32 to vector<8x32xf32>
    %16 = arith.maximumf %14, %15 : vector<8x32xf32>
    %c0_14 = arith.constant 0 : index
    %c0_15 = arith.constant 0 : index
    %17 = vector.load %arg7[%c0_14, %c0_15] : memref<32x32xf32, #tpu.memory_space<vmem>>, vector<32x32xf32>
    %cst_16 = arith.constant dense<0.000000e+00> : vector<8x32xf32>
    %18 = tpu.matmul %16, %17, %cst_16 {dimension_numbers = #tpu.dot_dimension_numbers<[1], [0], [0], [1], [0, 0, 1, 1], [], []>} : vector<8x32xf32>, vector<32x32xf32>, vector<8x32xf32> -> vector<8x32xf32>
    %c0_17 = arith.constant 0 : index
    %c0_18 = arith.constant 0 : index
    %19 = vector.load %arg8[%c0_17, %c0_18] : memref<1x32xf32, #tpu.memory_space<vmem>>, vector<1x32xf32>
    %20 = vector.broadcast %19 : vector<1x32xf32> to vector<8x32xf32>
    %21 = arith.addf %18, %20 : vector<8x32xf32>
    %cst_19 = arith.constant 0.000000e+00 : f32
    %22 = vector.broadcast %cst_19 : f32 to vector<8x32xf32>
    %23 = arith.maximumf %21, %22 : vector<8x32xf32>
    %24 = arith.addf %23, %9 : vector<8x32xf32>
    %c0_20 = arith.constant 0 : index
    %c0_21 = arith.constant 0 : index
    %25 = vector.load %arg9[%c0_20, %c0_21] : memref<8x32xf32, #tpu.memory_space<vmem>>, vector<8x32xf32>
    tpu.vector_store %arg9[%c0_20, %c0_21], %24 {strides = array<i32>} : memref<8x32xf32, #tpu.memory_space<vmem>>, vector<8x32xf32>,
    return
  }
  func.func @transform_0(%arg0: i32) -> (i32, i32) {
    %c0_i32 = arith.constant 0 : i32
    %c0_i32_0 = arith.constant 0 : i32
    return %arg0, %c0_i32 : i32, i32
  }
  func.func @transform_1(%arg0: i32) -> (i32, i32) {
    %c0_i32 = arith.constant 0 : i32
    %c0_i32_0 = arith.constant 0 : i32
    return %arg0, %c0_i32 : i32, i32
  }
  func.func @transform_2(%arg0: i32) -> (i32, i32) {
    %c0_i32 = arith.constant 0 : i32
    %c0_i32_0 = arith.constant 0 : i32
    %c0_i32_1 = arith.constant 0 : i32
    return %c0_i32, %c0_i32_0 : i32, i32
  }
  func.func @transform_3(%arg0: i32) -> (i32, i32) {
    %c0_i32 = arith.constant 0 : i32
    %c0_i32_0 = arith.constant 0 : i32
    %c0_i32_1 = arith.constant 0 : i32
    return %c0_i32, %c0_i32_0 : i32, i32
  }
  func.func @transform_4(%arg0: i32) -> (i32, i32) {
    %c0_i32 = arith.constant 0 : i32
    %c0_i32_0 = arith.constant 0 : i32
    %c0_i32_1 = arith.constant 0 : i32
    return %c0_i32, %c0_i32_0 : i32, i32
  }
  func.func @transform_5(%arg0: i32) -> (i32, i32) {
    %c0_i32 = arith.constant 0 : i32
    %c0_i32_0 = arith.constant 0 : i32
    %c0_i32_1 = arith.constant 0 : i32
    return %c0_i32, %c0_i32_0 : i32, i32
  }
  func.func @transform_6(%arg0: i32) -> (i32, i32) {
    %c0_i32 = arith.constant 0 : i32
    %c0_i32_0 = arith.constant 0 : i32
    %c0_i32_1 = arith.constant 0 : i32
    return %c0_i32, %c0_i32_0 : i32, i32
  }
  func.func @transform_7(%arg0: i32) -> (i32, i32) {
    %c0_i32 = arith.constant 0 : i32
    %c0_i32_0 = arith.constant 0 : i32
    %c0_i32_1 = arith.constant 0 : i32
    return %c0_i32, %c0_i32_0 : i32, i32
  }
  func.func @transform_8(%arg0: i32) -> (i32, i32) {
    %c0_i32 = arith.constant 0 : i32
    %c0_i32_0 = arith.constant 0 : i32
    return %arg0, %c0_i32 : i32, i32
  }
}

module attributes {stable_mosaic.version = 11 : i64} {
  func.func @_resmlp_kernel_with_img(%arg0: i32, %arg1: memref<8x32xf32, #tpu.memory_space<vmem>>, %arg2: memref<8x16xf32, #tpu.memory_space<vmem>>, %arg3: memref<16x32xf32, #tpu.memory_space<vmem>>, %arg4: memref<1x32xf32, #tpu.memory_space<vmem>>, %arg5: memref<32x32xf32, #tpu.memory_space<vmem>>, %arg6: memref<1x32xf32, #tpu.memory_space<vmem>>, %arg7: memref<32x32xf32, #tpu.memory_space<vmem>>, %arg8: memref<1x32xf32, #tpu.memory_space<vmem>>, %arg9: memref<8x32xf32, #tpu.memory_space<vmem>>) attributes {dimension_semantics = [#tpu.dimension_semantics<parallel>], iteration_bounds = array<i64: 1>, scalar_prefetch = 0 : i64, scratch_operands = 0 : i64, tpu.core_type = #tpu.core_type<tc>, window_params = [{transform_indices = @transform_0, window_bounds = array<i64: 8, 32>}, {transform_indices = @transform_1, window_bounds = array<i64: 8, 16>}, {pipeline_mode = #tpu.pipeline_mode<synchronous>, transform_indices = @transform_2, window_bounds = array<i64: 16, 32>}, {pipeline_mode = #tpu.pipeline_mode<synchronous>, transform_indices = @transform_3, window_bounds = array<i64: 1, 32>}, {pipeline_mode = #tpu.pipeline_mode<synchronous>, transform_indices = @transform_4, window_bounds = array<i64: 32, 32>}, {pipeline_mode = #tpu.pipeline_mode<synchronous>, transform_indices = @transform_5, window_bounds = array<i64: 1, 32>}, {pipeline_mode = #tpu.pipeline_mode<synchronous>, transform_indices = @transform_6, window_bounds = array<i64: 32, 32>}, {pipeline_mode = #tpu.pipeline_mode<synchronous>, transform_indices = @transform_7, window_bounds = array<i64: 1, 32>}, {transform_indices = @transform_8, window_bounds = array<i64: 8, 32>}]} {
    %c0 = arith.constant 0 : index
    %c0_0 = arith.constant 0 : index
    %0 = vector.load %arg1[%c0, %c0_0] : memref<8x32xf32, #tpu.memory_space<vmem>>, vector<8x32xf32>
    %c0_1 = arith.constant 0 : index
    %c0_2 = arith.constant 0 : index
    %1 = vector.load %arg2[%c0_1, %c0_2] : memref<8x16xf32, #tpu.memory_space<vmem>>, vector<8x16xf32>
    %c0_3 = arith.constant 0 : index
    %c0_4 = arith.constant 0 : index
    %2 = vector.load %arg3[%c0_3, %c0_4] : memref<16x32xf32, #tpu.memory_space<vmem>>, vector<16x32xf32>
    %cst = arith.constant dense<0.000000e+00> : vector<8x32xf32>
    %3 = tpu.matmul %1, %2, %cst {dimension_numbers = #tpu.dot_dimension_numbers<[1], [0], [0], [1], [0, 0, 1, 1], [], []>} : vector<8x16xf32>, vector<16x32xf32>, vector<8x32xf32> -> vector<8x32xf32>
    %c0_5 = arith.constant 0 : index
    %c0_6 = arith.constant 0 : index
    %4 = vector.load %arg4[%c0_5, %c0_6] : memref<1x32xf32, #tpu.memory_space<vmem>>, vector<1x32xf32>
    %5 = vector.broadcast %4 : vector<1x32xf32> to vector<8x32xf32>
    %6 = arith.addf %3, %5 : vector<8x32xf32>
    %cst_7 = arith.constant 0.000000e+00 : f32
    %7 = vector.broadcast %cst_7 : f32 to vector<8x32xf32>
    %8 = arith.maximumf %6, %7 : vector<8x32xf32>
    %9 = arith.addf %0, %8 : vector<8x32xf32>
    %c0_8 = arith.constant 0 : index
    %c0_9 = arith.constant 0 : index
    %10 = vector.load %arg5[%c0_8, %c0_9] : memref<32x32xf32, #tpu.memory_space<vmem>>, vector<32x32xf32>
    %cst_10 = arith.constant dense<0.000000e+00> : vector<8x32xf32>
    %11 = tpu.matmul %9, %10, %cst_10 {dimension_numbers = #tpu.dot_dimension_numbers<[1], [0], [0], [1], [0, 0, 1, 1], [], []>} : vector<8x32xf32>, vector<32x32xf32>, vector<8x32xf32> -> vector<8x32xf32>
    %c0_11 = arith.constant 0 : index
    %c0_12 = arith.constant 0 : index
    %12 = vector.load %arg6[%c0_11, %c0_12] : memref<1x32xf32, #tpu.memory_space<vmem>>, vector<1x32xf32>
    %13 = vector.broadcast %12 : vector<1x32xf32> to vector<8x32xf32>
    %14 = arith.addf %11, %13 : vector<8x32xf32>
    %cst_13 = arith.constant 0.000000e+00 : f32
    %15 = vector.broadcast %cst_13 : f32 to vector<8x32xf32>
    %16 = arith.maximumf %14, %15 : vector<8x32xf32>
    %c0_14 = arith.constant 0 : index
    %c0_15 = arith.constant 0 : index
    %17 = vector.load %arg7[%c0_14, %c0_15] : memref<32x32xf32, #tpu.memory_space<vmem>>, vector<32x32xf32>
    %cst_16 = arith.constant dense<0.000000e+00> : vector<8x32xf32>
    %18 = tpu.matmul %16, %17, %cst_16 {dimension_numbers = #tpu.dot_dimension_numbers<[1], [0], [0], [1], [0, 0, 1, 1], [], []>} : vector<8x32xf32>, vector<32x32xf32>, vector<8x32xf32> -> vector<8x32xf32>
    %c0_17 = arith.constant 0 : index
    %c0_18 = arith.constant 0 : index
    %19 = vector.load %arg8[%c0_17, %c0_18] : memref<1x32xf32, #tpu.memory_space<vmem>>, vector<1x32xf32>
    %20 = vector.broadcast %19 : vector<1x32xf32> to vector<8x32xf32>
    %21 = arith.addf %18, %20 : vector<8x32xf32>
    %cst_19 = arith.constant 0.000000e+00 : f32
    %22 = vector.broadcast %cst_19 : f32 to vector<8x32xf32>
    %23 = arith.maximumf %21, %22 : vector<8x32xf32>
    %24 = arith.addf %23, %9 : vector<8x32xf32>
    %c0_20 = arith.constant 0 : index
    %c0_21 = arith.constant 0 : index
    %25 = vector.load %arg9[%c0_20, %c0_21] : memref<8x32xf32, #tpu.memory_space<vmem>>, vector<8x32xf32>
    tpu.vector_store %arg9[%c0_20, %c0_21], %24 {strides = array<i32>} : memref<8x32xf32, #tpu.memory_space<vmem>>, vector<8x32xf32>,
    return
  }
  func.func @transform_0(%arg0: i32) -> (i32, i32) {
    %c0_i32 = arith.constant 0 : i32
    %c0_i32_0 = arith.constant 0 : i32
    return %arg0, %c0_i32 : i32, i32
  }
  func.func @transform_1(%arg0: i32) -> (i32, i32) {
    %c0_i32 = arith.constant 0 : i32
    %c0_i32_0 = arith.constant 0 : i32
    return %arg0, %c0_i32 : i32, i32
  }
  func.func @transform_2(%arg0: i32) -> (i32, i32) {
    %c0_i32 = arith.constant 0 : i32
    %c0_i32_0 = arith.constant 0 : i32
    %c0_i32_1 = arith.constant 0 : i32
    return %c0_i32, %c0_i32_0 : i32, i32
  }
  func.func @transform_3(%arg0: i32) -> (i32, i32) {
    %c0_i32 = arith.constant 0 : i32
    %c0_i32_0 = arith.constant 0 : i32
    %c0_i32_1 = arith.constant 0 : i32
    return %c0_i32, %c0_i32_0 : i32, i32
  }
  func.func @transform_4(%arg0: i32) -> (i32, i32) {
    %c0_i32 = arith.constant 0 : i32
    %c0_i32_0 = arith.constant 0 : i32
    %c0_i32_1 = arith.constant 0 : i32
    return %c0_i32, %c0_i32_0 : i32, i32
  }
  func.func @transform_5(%arg0: i32) -> (i32, i32) {
    %c0_i32 = arith.constant 0 : i32
    %c0_i32_0 = arith.constant 0 : i32
    %c0_i32_1 = arith.constant 0 : i32
    return %c0_i32, %c0_i32_0 : i32, i32
  }
  func.func @transform_6(%arg0: i32) -> (i32, i32) {
    %c0_i32 = arith.constant 0 : i32
    %c0_i32_0 = arith.constant 0 : i32
    %c0_i32_1 = arith.constant 0 : i32
    return %c0_i32, %c0_i32_0 : i32, i32
  }
  func.func @transform_7(%arg0: i32) -> (i32, i32) {
    %c0_i32 = arith.constant 0 : i32
    %c0_i32_0 = arith.constant 0 : i32
    %c0_i32_1 = arith.constant 0 : i32
    return %c0_i32, %c0_i32_0 : i32, i32
  }
  func.func @transform_8(%arg0: i32) -> (i32, i32) {
    %c0_i32 = arith.constant 0 : i32
    %c0_i32_0 = arith.constant 0 : i32
    return %arg0, %c0_i32 : i32, i32
  }
}

</mosaic_0001>

<bundles_post_ra>
// kernel: tpu_custom_call.1
= control target key start
LH: loop header
LB: loop body
LE: loop exit
PB: predicated region body
PF: predicated region fallthrough
CT: control target
= control target key end

     0   :  { %13 = vsyncpa [#allocation3], 0  ;;  %s734_s0 = inlined_call_operand.hbm [shape: f32[8,32], index: 0, kind: input, shape index: {}]   ;;  %s735_s1 = inlined_call_operand.hbm [shape: f32[8,16], index: 1, kind: input, shape index: {}]   ;;  %s736_s2 = inlined_call_operand.hbm [shape: f32[16,32], index: 2, kind: input, shape index: {}]   ;;  %s737_s3 = inlined_call_operand.vmem [shape: f32[1,32], index: 3, kind: input, shape index: {}]   ;;  %s738_s4 = inlined_call_operand.hbm [shape: f32[32,32], index: 4, kind: input, shape index: {}]   ;;  %s739_s5 = inlined_call_operand.vmem [shape: f32[1,32], index: 5, kind: input, shape index: {}]   ;;  %s740_s6 = inlined_call_operand.hbm [shape: f32[32,32], index: 6, kind: input, shape index: {}]   ;;  %s741_s7 = inlined_call_operand.vmem [shape: f32[1,32], index: 7, kind: input, shape index: {}]   ;;  %s742_s8 = inlined_call_operand.hbm [shape: f32[8,32], index: 8, kind: output, shape index: {}]  }
   0x1   :  { %14 = vsyncpa [#allocation6], 0 }
   0x2   :  { %15 = vsyncpa [#allocation9], 0 }
   0x3   :  { %16 = vsyncpa [#allocation4], 0  ;;  %s585_s27 = smov [#allocation5]   ;;  %s445_s9 = scalar_lea.hbm %s735_s1, 128 }
   0x4   :  { %s33_s28 = sshll.u32 %s585_s27, 4  ;;  %p446_p0 = scmp.ne.s32.totalorder %s735_s1, %s445_s9  ;;  %s34_s28 = int_to_ptr.vmem [resolvable:$true] %s33_s28 }
   0x5   :  { %p449_p1 = scmp.lt.u32.totalorder %s445_s9, %s735_s1 }
   0x7   :  { %p451_p2 = pnand %p449_p1, %p446_p0 }
   0x9   :  { %454 = shalt.err (!%p451_p2)
}
   0xa   :  { %s455_s14 = scalar_lea.vmem %s34_s28, 128  ;;  %p460_p4 = scmp.lt.s32.totalorder %s34_s28, %s34_s28 }
   0xb   :  { %p456_p3 = scmp.ne.s32.totalorder %s34_s28, %s455_s14  ;;  %p461_p5 = scmp.lt.s32.totalorder %s455_s14, %s455_s14 }
   0xd   :  { %p462_p6 = por %p461_p5, %p460_p4 }
   0xf   :  { %p463_p7 = pnand %p462_p6, %p456_p3 }
  0x11   :  { %466 = shalt.err (!%p463_p7)
}
  0x12   :  { %36 = dma.hbm_to_vmem [thread:$0]  %s735_s1, 128, %s34_s28, [#allocation6]  }
  0x13   :  { %s586_s17 = smov [#allocation8]   ;;  %s587_s19 = smov [#allocation2]  }
  0x14   :  { %s56_s18 = sshll.u32 %s586_s17, 4  ;;  %s23_s20 = sshll.u32 %s587_s19, 4  ;;  %s57_s18 = int_to_ptr.vmem [resolvable:$true] %s56_s18  ;;  %s24_s20 = int_to_ptr.vmem [resolvable:$true] %s23_s20 }
  0x15   :  { %s467_s23 = scalar_lea.hbm %s738_s4, 512 }
  0x16   :  { %p468_p8 = scmp.ne.s32.totalorder %s738_s4, %s467_s23  ;;  %p471_p9 = scmp.lt.u32.totalorder %s467_s23, %s738_s4 }
  0x18   :  { %p473_p10 = pnand %p471_p9, %p468_p8 }
  0x1a   :  { %476 = shalt.err (!%p473_p10)
}
  0x1b   :  { %s477_s1 = scalar_lea.vmem %s57_s18, 512  ;;  %p482_p12 = scmp.lt.s32.totalorder %s57_s18, %s57_s18 }
  0x1c   :  { %p478_p11 = scmp.ne.s32.totalorder %s57_s18, %s477_s1  ;;  %p483_p13 = scmp.lt.s32.totalorder %s477_s1, %s477_s1 }
  0x1e   :  { %p484_p0 = por %p483_p13, %p482_p12 }
  0x20   :  { %p485_p1 = pnand %p484_p0, %p478_p11 }
  0x22   :  { %488 = shalt.err (!%p485_p1)
}
  0x23   :  { %s588_s28 = smov 128   ;;  %s589_s29 = smov 8  }
  0x24   :  { %62 = dma.hbm_to_vmem [thread:$0]  %s738_s4, 512, %s57_s18, [#allocation9], %s588_s28, %s588_s28, %s589_s29  }
  0x25   :  { %s489_s12 = scalar_lea.hbm %s734_s0, 128 }
  0x26   :  { %p490_p2 = scmp.ne.s32.totalorder %s734_s0, %s489_s12  ;;  %p493_p3 = scmp.lt.u32.totalorder %s489_s12, %s734_s0 }
  0x28   :  { %p495_p4 = pnand %p493_p3, %p490_p2 }
  0x2a   :  { %498 = shalt.err (!%p495_p4)
}
  0x2b   :  { %s499_s17 = scalar_lea.vmem %s24_s20, 128  ;;  %p504_p6 = scmp.lt.s32.totalorder %s24_s20, %s24_s20 }
  0x2c   :  { %p500_p5 = scmp.ne.s32.totalorder %s24_s20, %s499_s17  ;;  %p505_p7 = scmp.lt.s32.totalorder %s499_s17, %s499_s17 }
  0x2e   :  { %p506_p8 = por %p505_p7, %p504_p6 }
  0x30   :  { %p507_p9 = pnand %p506_p8, %p500_p5 }
  0x32   :  { %510 = shalt.err (!%p507_p9)
}
  0x33   :  { %26 = dma.hbm_to_vmem [thread:$0]  %s734_s0, 128, %s24_s20, [#allocation3]  }
  0x34   :  { %s590_s19 = smov [#allocation7]   ;;  %s591_s22 = smov [#allocation10]  }
  0x35   :  { %s42_s21 = sshll.u32 %s590_s19, 4  ;;  %s70_s23 = sshll.u32 %s591_s22, 4  ;;  %s43_s21 = int_to_ptr.vmem [resolvable:$true] %s42_s21  ;;  %s71_s23 = int_to_ptr.vmem [resolvable:$true] %s70_s23 }
  0x36   :  { %s511_s26 = scalar_lea.hbm %s736_s2, 256 }
  0x37   :  { %p512_p10 = scmp.ne.s32.totalorder %s736_s2, %s511_s26  ;;  %p515_p11 = scmp.lt.u32.totalorder %s511_s26, %s736_s2 }
  0x39   :  { %p517_p12 = pnand %p515_p11, %p512_p10 }
  0x3b   :  { %520 = shalt.err (!%p517_p12)
}
  0x3c   :  { %s521_s0 = scalar_lea.vmem %s43_s21, 256  ;;  %p526_p0 = scmp.lt.s32.totalorder %s43_s21, %s43_s21 }
  0x3d   :  { %p522_p13 = scmp.ne.s32.totalorder %s43_s21, %s521_s0  ;;  %p527_p1 = scmp.lt.s32.totalorder %s521_s0, %s521_s0 }
  0x3f   :  { %p528_p2 = por %p527_p1, %p526_p0 }
  0x41   :  { %p529_p3 = pnand %p528_p2, %p522_p13 }
  0x43   :  { %532 = shalt.err (!%p529_p3)
}
  0x44   :  { %48 = dma.hbm_to_vmem [thread:$0]  %s736_s2, 256, %s43_s21, [#allocation6], %s588_s28, %s588_s28, %s589_s29  }
  0x45   :  { %s533_s13 = scalar_lea.hbm %s740_s6, 512 }
  0x46   :  { %p534_p4 = scmp.ne.s32.totalorder %s740_s6, %s533_s13  ;;  %p537_p5 = scmp.lt.u32.totalorder %s533_s13, %s740_s6 }
  0x48   :  { %p539_p6 = pnand %p537_p5, %p534_p4 }
  0x4a   :  { %542 = shalt.err (!%p539_p6)
}
  0x4b   :  { %s543_s4 = scalar_lea.vmem %s71_s23, 512  ;;  %p548_p8 = scmp.lt.s32.totalorder %s71_s23, %s71_s23 }
  0x4c   :  { %p544_p7 = scmp.ne.s32.totalorder %s71_s23, %s543_s4  ;;  %p549_p9 = scmp.lt.s32.totalorder %s543_s4, %s543_s4 }
  0x4e   :  { %p550_p10 = por %p549_p9, %p548_p8 }
  0x50   :  { %p551_p11 = pnand %p550_p10, %p544_p7 }
  0x52   :  { %554 = shalt.err (!%p551_p11)
}
  0x53   :  { %76 = dma.hbm_to_vmem [thread:$0]  %s740_s6, 512, %s71_s23, [#allocation9], %s588_s28, %s588_s28, %s589_s29  }
  0x54   :  { %577 = dma.done.wait [#allocation3], 128  }
  0x55   :  { %578 = vsyncadd [#allocation3], 4294967168 }
  0x56   :  { %579 = dma.done.wait [#allocation6], 384  }
  0x57   :  { %580 = vsyncadd [#allocation6], 4294966912 }
  0x58   :  { %581 = dma.done.wait [#allocation9], 1024  }
  0x59   :  { %582 = vsyncadd [#allocation9], 4294966272  ;;  %v592_v0 = vmov 0.0|0.0   ;;  %vm593_vm0 = vmmov 0   ;;  %v594_v1 = vmov 0.0   ;;  %v96_v2 = vld [vmem:[#allocation7] sm:$0xff] }
  0x5a   :  { %419 = vmatprep.subr.bf16.mxu0 %v592_v0  ;;  %394 = vmatprep.mubr.msk.f32.mxu0 %vm593_vm0, %v594_v1  ;;  %v97_v3 = vld [vmem:[#allocation7 + $0x8] sm:$0xff]  ;;  %v95_v5 = vld [vmem:[#allocation5] sm:$0xff]  ;;  %vm105_vm1 = vcmask 130048   ;;  %v181_v6 = vld [vmem:[#allocation8] sm:$0xff]  ;;  %vm192_vm2 = vcmask 261120   ;;  %s595_s22 = smov [#allocation11]  }
  0x5b   :  { %422 = vmatprep.subr.bf16.mxu1 %v592_v0  ;;  %405 = vmatprep.mubr.msk.f32.mxu1 %vm593_vm0, %v594_v1  ;;  %v420_v4 = vpack.c.bf16 %v97_v3, %v96_v2  ;;  %v182_v7 = vld [vmem:[#allocation8 + $0x8] sm:$0xff]  ;;  %v183_v9 = vld [vmem:[#allocation8 + $0x10] sm:$0xff]  ;;  %v184_v10 = vld [vmem:[#allocation8 + $0x18] sm:$0xff]  ;;  %s360_s23 = sshll.u32 %s595_s22, 4  ;;  %s361_s23 = int_to_ptr.vmem [resolvable:$true] %s360_s23 }
  0x5c   :  { %v423_v8 = vpack.c.bf16 %v182_v7, %v181_v6  ;;  %v426_v11 = vpack.c.bf16 %v184_v10, %v183_v9  ;;  %v267_v12 = vld [vmem:[#allocation10] sm:$0xff]  ;;  %v268_v13 = vld [vmem:[#allocation10 + $0x8] sm:$0xff]  ;;  %v269_v22 = vld [vmem:[#allocation10 + $0x10] sm:$0xff]  ;;  %p560_p13 = scmp.lt.s32.totalorder %s361_s23, %s361_s23 }
  0x5d   :  { %421 = vmatpush3.bf16.msra.mxu0 %v420_v4  ;;  %v429_v14 = vpack.c.bf16 %v268_v13, %v267_v12  ;;  %v371_v15 = vld [vmem:[%s737_s3] ss:$0 sm:$0xff]  ;;  %v270_v23 = vld [vmem:[#allocation10 + $0x18] sm:$0xff] }
  0x5e   :  { %428 = vmatprep.subr.bf16.mxu0 %v592_v0  ;;  %424 = vmatpush3.bf16.msra.mxu1 %v423_v8  ;;  %v94_v19 = vld [vmem:[#allocation2] sm:$0xff]  ;;  %v432_v24 = vpack.c.bf16 %v270_v23, %v269_v22 }
  0x5f   :  { %425 = vmatprep.subr.bf16.mxu1 %v592_v0  ;;  %v373_v25 = vld [vmem:[%s739_s5] ss:$0 sm:$0xff]  ;;  %s555_s5 = scalar_lea.vmem %s361_s23, 128 }
  0x60   :  { %395 = vmatmul.mubr.msk.f32.vlgmr.msra.gmra.mrb[0].mxu0 %vm105_vm1, %v95_v5  ;;  %v375_v30 = vld [vmem:[%s741_s7] ss:$0 sm:$0xff]  ;;  %p556_p12 = scmp.ne.s32.totalorder %s361_s23, %s555_s5  ;;  %p561_p0 = scmp.lt.s32.totalorder %s555_s5, %s555_s5 }
  0x61   :  { %416 = vmatprep.mubr.msk.f32.mxu0 %vm593_vm0, %v594_v1  ;;  %430 = vmatpush3.bf16.msra.mxu0 %v429_v14 }
  0x62   :  { %427 = vmatpush3.bf16.msra.mxu1 %v426_v11  ;;  %431 = vmatprep.subr.bf16.mxu0 %v592_v0  ;;  %p562_p1 = por %p561_p0, %p560_p13 }
  0x64   :  { %p563_p2 = pnand %p562_p1, %p556_p12 }
  0x65   :  { %433 = vmatpush3.bf16.msra.mxu0 %v432_v24 }
 0x133   :  { %v175_v16 = vpop.f32.mrb[0].mxu0 }
 0x134   :  { %v176_v17 = vadd.f32 %v371_v15, %v175_v16  ;;  %v396_v18 = vpop.f32.mrb[1].mxu0 }
 0x136   :  { %v179_v20 = vmax.f32 %v176_v17, 0.0 }
 0x138   :  { %v180_v21 = vadd.f32 %v179_v20, %v94_v19 }
 0x13a   :  { %406 = vmatmul.mubr.msk.f32.vlgmr.msra.gmra.mrb[0].mxu1 %vm192_vm2, %v180_v21 }
 0x20d   :  { %v262_v26 = vpop.f32.mrb[0].mxu1 }
 0x20e   :  { %v263_v27 = vadd.f32 %v373_v25, %v262_v26  ;;  %v407_v28 = vpop.f32.mrb[1].mxu1 }
 0x210   :  { %v266_v29 = vmax.f32 %v263_v27, 0.0 }
 0x212   :  { %417 = vmatmul.mubr.msk.f32.vlgmr.msra.gmra.mrb[2].mxu0 %vm192_vm2, %v266_v29 }
 0x2e5   :  { %v347_v31 = vpop.f32.mrb[2].mxu0 }
 0x2e6   :  { %v348_v32 = vadd.f32 %v375_v30, %v347_v31  ;;  %v418_v33 = vpop.f32.mrb[3].mxu0 }
 0x2e8   :  { %v351_v34 = vmax.f32 %v348_v32, 0.0 }
 0x2ea   :  { %v352_v35 = vadd.f32 %v351_v34, %v180_v21 }
 0x2ec   :  { %353 = vst.msk [vmem:[#allocation11] sm:$0xff] %vm192_vm2, %v352_v35 }
 0x2ed   :  { %566 = shalt.err (!%p563_p2)
}
 0x2ee   :  { %s567_s7 = scalar_lea.hbm %s742_s8, 128 }
 0x2ef   :  { %p568_p3 = scmp.ne.s32.totalorder %s742_s8, %s567_s7  ;;  %p571_p4 = scmp.lt.u32.totalorder %s567_s7, %s742_s8 }
 0x2f1   :  { %p573_p5 = pnand %p571_p4, %p568_p3 }
 0x2f3   :  { %576 = shalt.err (!%p573_p5)
}
 0x2f4   :  { %363 = dma.vmem_to_hbm [thread:$0]  %s361_s23, 128, %s742_s8, [#allocation4]  }
 0x2f5   :  { %583 = dma.done.wait [#allocation4], 128  }
 0x2f6   :  { %584 = vsyncadd [#allocation4], 4294967168 }
 0x2f7   :  { %367 = vsyncpa [#allocation3], 1 }
 0x2f8   :  { %368 = vsyncpa [#allocation6], 1 }
 0x2f9   :  { %369 = vsyncpa [#allocation9], 1 }
 0x2fa   :  { %370 = vsyncpa [#allocation4], 1 }

// kernel: tpu_custom_call.1
= control target key start
LH: loop header
LB: loop body
LE: loop exit
PB: predicated region body
PF: predicated region fallthrough
CT: control target
= control target key end

     0   :  { %13 = vsyncpa [#allocation3], 0  ;;  %s734_s0 = inlined_call_operand.hbm [shape: f32[8,32], index: 0, kind: input, shape index: {}]   ;;  %s735_s1 = inlined_call_operand.hbm [shape: f32[8,16], index: 1, kind: input, shape index: {}]   ;;  %s736_s2 = inlined_call_operand.hbm [shape: f32[16,32], index: 2, kind: input, shape index: {}]   ;;  %s737_s3 = inlined_call_operand.vmem [shape: f32[1,32], index: 3, kind: input, shape index: {}]   ;;  %s738_s4 = inlined_call_operand.hbm [shape: f32[32,32], index: 4, kind: input, shape index: {}]   ;;  %s739_s5 = inlined_call_operand.vmem [shape: f32[1,32], index: 5, kind: input, shape index: {}]   ;;  %s740_s6 = inlined_call_operand.hbm [shape: f32[32,32], index: 6, kind: input, shape index: {}]   ;;  %s741_s7 = inlined_call_operand.vmem [shape: f32[1,32], index: 7, kind: input, shape index: {}]   ;;  %s742_s8 = inlined_call_operand.hbm [shape: f32[8,32], index: 8, kind: output, shape index: {}]  }
   0x1   :  { %14 = vsyncpa [#allocation6], 0 }
   0x2   :  { %15 = vsyncpa [#allocation9], 0 }
   0x3   :  { %16 = vsyncpa [#allocation4], 0  ;;  %s585_s27 = smov [#allocation5]   ;;  %s445_s9 = scalar_lea.hbm %s735_s1, 128 }
   0x4   :  { %s33_s28 = sshll.u32 %s585_s27, 4  ;;  %p446_p0 = scmp.ne.s32.totalorder %s735_s1, %s445_s9  ;;  %s34_s28 = int_to_ptr.vmem [resolvable:$true] %s33_s28 }
   0x5   :  { %p449_p1 = scmp.lt.u32.totalorder %s445_s9, %s735_s1 }
   0x7   :  { %p451_p2 = pnand %p449_p1, %p446_p0 }
   0x9   :  { %454 = shalt.err (!%p451_p2)
}
   0xa   :  { %s455_s14 = scalar_lea.vmem %s34_s28, 128  ;;  %p460_p4 = scmp.lt.s32.totalorder %s34_s28, %s34_s28 }
   0xb   :  { %p456_p3 = scmp.ne.s32.totalorder %s34_s28, %s455_s14  ;;  %p461_p5 = scmp.lt.s32.totalorder %s455_s14, %s455_s14 }
   0xd   :  { %p462_p6 = por %p461_p5, %p460_p4 }
   0xf   :  { %p463_p7 = pnand %p462_p6, %p456_p3 }
  0x11   :  { %466 = shalt.err (!%p463_p7)
}
  0x12   :  { %36 = dma.hbm_to_vmem [thread:$0]  %s735_s1, 128, %s34_s28, [#allocation6]  }
  0x13   :  { %s586_s17 = smov [#allocation8]   ;;  %s587_s19 = smov [#allocation2]  }
  0x14   :  { %s56_s18 = sshll.u32 %s586_s17, 4  ;;  %s23_s20 = sshll.u32 %s587_s19, 4  ;;  %s57_s18 = int_to_ptr.vmem [resolvable:$true] %s56_s18  ;;  %s24_s20 = int_to_ptr.vmem [resolvable:$true] %s23_s20 }
  0x15   :  { %s467_s23 = scalar_lea.hbm %s738_s4, 512 }
  0x16   :  { %p468_p8 = scmp.ne.s32.totalorder %s738_s4, %s467_s23  ;;  %p471_p9 = scmp.lt.u32.totalorder %s467_s23, %s738_s4 }
  0x18   :  { %p473_p10 = pnand %p471_p9, %p468_p8 }
  0x1a   :  { %476 = shalt.err (!%p473_p10)
}
  0x1b   :  { %s477_s1 = scalar_lea.vmem %s57_s18, 512  ;;  %p482_p12 = scmp.lt.s32.totalorder %s57_s18, %s57_s18 }
  0x1c   :  { %p478_p11 = scmp.ne.s32.totalorder %s57_s18, %s477_s1  ;;  %p483_p13 = scmp.lt.s32.totalorder %s477_s1, %s477_s1 }
  0x1e   :  { %p484_p0 = por %p483_p13, %p482_p12 }
  0x20   :  { %p485_p1 = pnand %p484_p0, %p478_p11 }
  0x22   :  { %488 = shalt.err (!%p485_p1)
}
  0x23   :  { %s588_s28 = smov 128   ;;  %s589_s29 = smov 8  }
  0x24   :  { %62 = dma.hbm_to_vmem [thread:$0]  %s738_s4, 512, %s57_s18, [#allocation9], %s588_s28, %s588_s28, %s589_s29  }
  0x25   :  { %s489_s12 = scalar_lea.hbm %s734_s0, 128 }
  0x26   :  { %p490_p2 = scmp.ne.s32.totalorder %s734_s0, %s489_s12  ;;  %p493_p3 = scmp.lt.u32.totalorder %s489_s12, %s734_s0 }
  0x28   :  { %p495_p4 = pnand %p493_p3, %p490_p2 }
  0x2a   :  { %498 = shalt.err (!%p495_p4)
}
  0x2b   :  { %s499_s17 = scalar_lea.vmem %s24_s20, 128  ;;  %p504_p6 = scmp.lt.s32.totalorder %s24_s20, %s24_s20 }
  0x2c   :  { %p500_p5 = scmp.ne.s32.totalorder %s24_s20, %s499_s17  ;;  %p505_p7 = scmp.lt.s32.totalorder %s499_s17, %s499_s17 }
  0x2e   :  { %p506_p8 = por %p505_p7, %p504_p6 }
  0x30   :  { %p507_p9 = pnand %p506_p8, %p500_p5 }
  0x32   :  { %510 = shalt.err (!%p507_p9)
}
  0x33   :  { %26 = dma.hbm_to_vmem [thread:$0]  %s734_s0, 128, %s24_s20, [#allocation3]  }
  0x34   :  { %s590_s19 = smov [#allocation7]   ;;  %s591_s22 = smov [#allocation10]  }
  0x35   :  { %s42_s21 = sshll.u32 %s590_s19, 4  ;;  %s70_s23 = sshll.u32 %s591_s22, 4  ;;  %s43_s21 = int_to_ptr.vmem [resolvable:$true] %s42_s21  ;;  %s71_s23 = int_to_ptr.vmem [resolvable:$true] %s70_s23 }
  0x36   :  { %s511_s26 = scalar_lea.hbm %s736_s2, 256 }
  0x37   :  { %p512_p10 = scmp.ne.s32.totalorder %s736_s2, %s511_s26  ;;  %p515_p11 = scmp.lt.u32.totalorder %s511_s26, %s736_s2 }
  0x39   :  { %p517_p12 = pnand %p515_p11, %p512_p10 }
  0x3b   :  { %520 = shalt.err (!%p517_p12)
}
  0x3c   :  { %s521_s0 = scalar_lea.vmem %s43_s21, 256  ;;  %p526_p0 = scmp.lt.s32.totalorder %s43_s21, %s43_s21 }
  0x3d   :  { %p522_p13 = scmp.ne.s32.totalorder %s43_s21, %s521_s0  ;;  %p527_p1 = scmp.lt.s32.totalorder %s521_s0, %s521_s0 }
  0x3f   :  { %p528_p2 = por %p527_p1, %p526_p0 }
  0x41   :  { %p529_p3 = pnand %p528_p2, %p522_p13 }
  0x43   :  { %532 = shalt.err (!%p529_p3)
}
  0x44   :  { %48 = dma.hbm_to_vmem [thread:$0]  %s736_s2, 256, %s43_s21, [#allocation6], %s588_s28, %s588_s28, %s589_s29  }
  0x45   :  { %s533_s13 = scalar_lea.hbm %s740_s6, 512 }
  0x46   :  { %p534_p4 = scmp.ne.s32.totalorder %s740_s6, %s533_s13  ;;  %p537_p5 = scmp.lt.u32.totalorder %s533_s13, %s740_s6 }
  0x48   :  { %p539_p6 = pnand %p537_p5, %p534_p4 }
  0x4a   :  { %542 = shalt.err (!%p539_p6)
}
  0x4b   :  { %s543_s4 = scalar_lea.vmem %s71_s23, 512  ;;  %p548_p8 = scmp.lt.s32.totalorder %s71_s23, %s71_s23 }
  0x4c   :  { %p544_p7 = scmp.ne.s32.totalorder %s71_s23, %s543_s4  ;;  %p549_p9 = scmp.lt.s32.totalorder %s543_s4, %s543_s4 }
  0x4e   :  { %p550_p10 = por %p549_p9, %p548_p8 }
  0x50   :  { %p551_p11 = pnand %p550_p10, %p544_p7 }
  0x52   :  { %554 = shalt.err (!%p551_p11)
}
  0x53   :  { %76 = dma.hbm_to_vmem [thread:$0]  %s740_s6, 512, %s71_s23, [#allocation9], %s588_s28, %s588_s28, %s589_s29  }
  0x54   :  { %577 = dma.done.wait [#allocation3], 128  }
  0x55   :  { %578 = vsyncadd [#allocation3], 4294967168 }
  0x56   :  { %579 = dma.done.wait [#allocation6], 384  }
  0x57   :  { %580 = vsyncadd [#allocation6], 4294966912 }
  0x58   :  { %581 = dma.done.wait [#allocation9], 1024  }
  0x59   :  { %582 = vsyncadd [#allocation9], 4294966272  ;;  %v592_v0 = vmov 0.0|0.0   ;;  %vm593_vm0 = vmmov 0   ;;  %v594_v1 = vmov 0.0   ;;  %v96_v2 = vld [vmem:[#allocation7] sm:$0xff] }
  0x5a   :  { %419 = vmatprep.subr.bf16.mxu0 %v592_v0  ;;  %394 = vmatprep.mubr.msk.f32.mxu0 %vm593_vm0, %v594_v1  ;;  %v97_v3 = vld [vmem:[#allocation7 + $0x8] sm:$0xff]  ;;  %v95_v5 = vld [vmem:[#allocation5] sm:$0xff]  ;;  %vm105_vm1 = vcmask 130048   ;;  %v181_v6 = vld [vmem:[#allocation8] sm:$0xff]  ;;  %vm192_vm2 = vcmask 261120   ;;  %s595_s22 = smov [#allocation11]  }
  0x5b   :  { %422 = vmatprep.subr.bf16.mxu1 %v592_v0  ;;  %405 = vmatprep.mubr.msk.f32.mxu1 %vm593_vm0, %v594_v1  ;;  %v420_v4 = vpack.c.bf16 %v97_v3, %v96_v2  ;;  %v182_v7 = vld [vmem:[#allocation8 + $0x8] sm:$0xff]  ;;  %v183_v9 = vld [vmem:[#allocation8 + $0x10] sm:$0xff]  ;;  %v184_v10 = vld [vmem:[#allocation8 + $0x18] sm:$0xff]  ;;  %s360_s23 = sshll.u32 %s595_s22, 4  ;;  %s361_s23 = int_to_ptr.vmem [resolvable:$true] %s360_s23 }
  0x5c   :  { %v423_v8 = vpack.c.bf16 %v182_v7, %v181_v6  ;;  %v426_v11 = vpack.c.bf16 %v184_v10, %v183_v9  ;;  %v267_v12 = vld [vmem:[#allocation10] sm:$0xff]  ;;  %v268_v13 = vld [vmem:[#allocation10 + $0x8] sm:$0xff]  ;;  %v269_v22 = vld [vmem:[#allocation10 + $0x10] sm:$0xff]  ;;  %p560_p13 = scmp.lt.s32.totalorder %s361_s23, %s361_s23 }
  0x5d   :  { %421 = vmatpush3.bf16.msra.mxu0 %v420_v4  ;;  %v429_v14 = vpack.c.bf16 %v268_v13, %v267_v12  ;;  %v371_v15 = vld [vmem:[%s737_s3] ss:$0 sm:$0xff]  ;;  %v270_v23 = vld [vmem:[#allocation10 + $0x18] sm:$0xff] }
  0x5e   :  { %428 = vmatprep.subr.bf16.mxu0 %v592_v0  ;;  %424 = vmatpush3.bf16.msra.mxu1 %v423_v8  ;;  %v94_v19 = vld [vmem:[#allocation2] sm:$0xff]  ;;  %v432_v24 = vpack.c.bf16 %v270_v23, %v269_v22 }
  0x5f   :  { %425 = vmatprep.subr.bf16.mxu1 %v592_v0  ;;  %v373_v25 = vld [vmem:[%s739_s5] ss:$0 sm:$0xff]  ;;  %s555_s5 = scalar_lea.vmem %s361_s23, 128 }
  0x60   :  { %395 = vmatmul.mubr.msk.f32.vlgmr.msra.gmra.mrb[0].mxu0 %vm105_vm1, %v95_v5  ;;  %v375_v30 = vld [vmem:[%s741_s7] ss:$0 sm:$0xff]  ;;  %p556_p12 = scmp.ne.s32.totalorder %s361_s23, %s555_s5  ;;  %p561_p0 = scmp.lt.s32.totalorder %s555_s5, %s555_s5 }
  0x61   :  { %416 = vmatprep.mubr.msk.f32.mxu0 %vm593_vm0, %v594_v1  ;;  %430 = vmatpush3.bf16.msra.mxu0 %v429_v14 }
  0x62   :  { %427 = vmatpush3.bf16.msra.mxu1 %v426_v11  ;;  %431 = vmatprep.subr.bf16.mxu0 %v592_v0  ;;  %p562_p1 = por %p561_p0, %p560_p13 }
  0x64   :  { %p563_p2 = pnand %p562_p1, %p556_p12 }
  0x65   :  { %433 = vmatpush3.bf16.msra.mxu0 %v432_v24 }
 0x133   :  { %v175_v16 = vpop.f32.mrb[0].mxu0 }
 0x134   :  { %v176_v17 = vadd.f32 %v371_v15, %v175_v16  ;;  %v396_v18 = vpop.f32.mrb[1].mxu0 }
 0x136   :  { %v179_v20 = vmax.f32 %v176_v17, 0.0 }
 0x138   :  { %v180_v21 = vadd.f32 %v179_v20, %v94_v19 }
 0x13a   :  { %406 = vmatmul.mubr.msk.f32.vlgmr.msra.gmra.mrb[0].mxu1 %vm192_vm2, %v180_v21 }
 0x20d   :  { %v262_v26 = vpop.f32.mrb[0].mxu1 }
 0x20e   :  { %v263_v27 = vadd.f32 %v373_v25, %v262_v26  ;;  %v407_v28 = vpop.f32.mrb[1].mxu1 }
 0x210   :  { %v266_v29 = vmax.f32 %v263_v27, 0.0 }
 0x212   :  { %417 = vmatmul.mubr.msk.f32.vlgmr.msra.gmra.mrb[2].mxu0 %vm192_vm2, %v266_v29 }
 0x2e5   :  { %v347_v31 = vpop.f32.mrb[2].mxu0 }
 0x2e6   :  { %v348_v32 = vadd.f32 %v375_v30, %v347_v31  ;;  %v418_v33 = vpop.f32.mrb[3].mxu0 }
 0x2e8   :  { %v351_v34 = vmax.f32 %v348_v32, 0.0 }
 0x2ea   :  { %v352_v35 = vadd.f32 %v351_v34, %v180_v21 }
 0x2ec   :  { %353 = vst.msk [vmem:[#allocation11] sm:$0xff] %vm192_vm2, %v352_v35 }
 0x2ed   :  { %566 = shalt.err (!%p563_p2)
}
 0x2ee   :  { %s567_s7 = scalar_lea.hbm %s742_s8, 128 }
 0x2ef   :  { %p568_p3 = scmp.ne.s32.totalorder %s742_s8, %s567_s7  ;;  %p571_p4 = scmp.lt.u32.totalorder %s567_s7, %s742_s8 }
 0x2f1   :  { %p573_p5 = pnand %p571_p4, %p568_p3 }
 0x2f3   :  { %576 = shalt.err (!%p573_p5)
}
 0x2f4   :  { %363 = dma.vmem_to_hbm [thread:$0]  %s361_s23, 128, %s742_s8, [#allocation4]  }
 0x2f5   :  { %583 = dma.done.wait [#allocation4], 128  }
 0x2f6   :  { %584 = vsyncadd [#allocation4], 4294967168 }
 0x2f7   :  { %367 = vsyncpa [#allocation3], 1 }
 0x2f8   :  { %368 = vsyncpa [#allocation6], 1 }
 0x2f9   :  { %369 = vsyncpa [#allocation9], 1 }
 0x2fa   :  { %370 = vsyncpa [#allocation4], 1 }

</bundles_post_ra>
